<compile_context>
chip_gen: v6e
topology: v6e:2x2x1
jax: 0.10.0
libtpu: 0.0.40
codegen_flags: <defaults>
</compile_context>

<pallas_src>
import jax
import jax.numpy as jnp
from jax.experimental import pallas as pl
from jax.experimental.pallas import tpu as pltpu

DIV_GUARD = 1e-5  # matches FeatureBatchNormalizer.div_guard


def _feature_batch_norm_kernel(lengths_ref, x_ref, o_ref):
    """One (batch, feature-tile) block per grid step.

    lengths_ref: SMEM int32[B]          (scalar-prefetched)
    x_ref:       VMEM (1, TILE_C, T)    input block
    o_ref:       VMEM (1, TILE_C, T)    output block
    """
    b = pl.program_id(0)
    T = x_ref.shape[-1]

    # Clamp length to the block's time extent (guard against lengths > T).
    length = jnp.minimum(lengths_ref[b], T)

    x = x_ref[...].astype(jnp.float32)                           # (1, TC, T)

    # Time mask built once at (1, 1, T); broadcast over the feature sublanes.
    t_idx = jax.lax.broadcasted_iota(jnp.int32, (1, 1, T), 2)
    mask = (t_idx < length).astype(jnp.float32)                  # (1, 1, T)

    n = jnp.maximum(length, 1).astype(jnp.float32)
    inv_n = 1.0 / n

    # Single fused traversal: sum and sum-of-squares over valid frames.
    masked = x * mask                                            # (1, TC, T)
    s1 = jnp.sum(masked, axis=-1, keepdims=True)                 # (1, TC, 1)
    s2 = jnp.sum(masked * x, axis=-1, keepdims=True)             # = sum(x^2 * mask)

    mean = s1 * inv_n
    var = jnp.maximum(s2 * inv_n - mean * mean, 0.0)             # clamp >= 0
    inv_std = jax.lax.rsqrt(var + DIV_GUARD)

    # Padded frames come out exactly 0 via the mask.
    o_ref[...] = ((x - mean) * mask * inv_std).astype(o_ref.dtype)


def _choose_tile_c(C: int, T: int) -> int:
    """Largest divisor of C that is a multiple of 8 and keeps the f32 working
    block at or under ~2 MiB; falls back to full C (allowed: block == full dim)."""
    if C % 8 != 0:
        return C
    target_bytes = 2 * 1024 * 1024
    per_row_bytes = T * 4  # kernel works in f32
    tile_c = 8
    for cand in range(8, C + 1, 8):
        if C % cand == 0 and cand * per_row_bytes <= target_bytes:
            tile_c = cand
    return tile_c


def feature_batch_normalizer(x: jax.Array, lengths: jax.Array):
    """JAX wrapper mirroring FeatureBatchNormalizer.forward.

    Args:
        x:       (batch, features, time) float array
        lengths: (batch,) int array of valid time frames per example
    Returns:
        (normalized_x, lengths)
    """
    B, C, T = x.shape
    lengths32 = lengths.astype(jnp.int32)

    # Pad T to a multiple of 128 for lane-dense stores; the pad region is
    # outside the length mask so it contributes nothing and outputs zeros.
    T_pad = ((T + 127) // 128) * 128
    x_in = x if T_pad == T else jnp.pad(x, ((0, 0), (0, 0), (0, T_pad - T)))

    tile_c = _choose_tile_c(C, T_pad)
    n_c_tiles = C // tile_c if C % tile_c == 0 else 1
    if C % tile_c != 0:  # defensive: fall back to full-C block
        tile_c = C

    out = pl.pallas_call(
        _feature_batch_norm_kernel,
        out_shape=jax.ShapeDtypeStruct((B, C, T_pad), x.dtype),
        grid_spec=pltpu.PrefetchScalarGridSpec(
            num_scalar_prefetch=1,
            grid=(B, n_c_tiles),
            in_specs=[
                pl.BlockSpec((1, tile_c, T_pad), lambda b, c, lens: (b, c, 0)),
            ],
            out_specs=pl.BlockSpec((1, tile_c, T_pad), lambda b, c, lens: (b, c, 0)),
        ),
        compiler_params=pltpu.CompilerParams(
            dimension_semantics=("parallel", "parallel")),
    )(lengths32, x_in)

    if T_pad != T:
        out = out[:, :, :T]
    return out, lengths


def _reference(x, lengths):
    """Pure-JAX reference of the same masked per-feature normalization."""
    B, C, T = x.shape
    mask = (jnp.arange(T)[None, :] < lengths[:, None]).astype(x.dtype)  # (B, T)
    mask = mask[:, None, :]                                             # (B,1,T)
    n = jnp.maximum(lengths, 1).astype(x.dtype)[:, None, None]
    mean = jnp.sum(x * mask, axis=-1, keepdims=True) / n
    centered = (x - mean) * mask
    var = jnp.sum(centered * centered, axis=-1, keepdims=True) / n
    return centered / jnp.sqrt(var + DIV_GUARD), lengths


if __name__ == "__main__":
    key = jax.random.PRNGKey(0)
    B, C, T = 2, 4, 16
    kx, _ = jax.random.split(key)
    x = jax.random.normal(kx, (B, C, T), dtype=jnp.float32)
    lengths = jnp.array([16, 9], dtype=jnp.int32)

    out, out_lengths = feature_batch_normalizer(x, lengths)
    out = jax.block_until_ready(out)

    ref_out, _ = _reference(x, lengths)
    assert out.shape == x.shape and out.dtype == x.dtype
    assert jnp.allclose(out, ref_out, atol=1e-5, rtol=1e-5)
    assert jnp.array_equal(out_lengths, lengths)

    print("KERNEL_OK")
</pallas_src>

<mosaic_0001>
module attributes {stable_mosaic.version = 11 : i64} {
  func.func @_feature_batch_norm_kernel(%arg0: i32, %arg1: i32, %arg2: memref<2xi32, #tpu.memory_space<smem>>, %arg3: memref<1x4x128xf32, #tpu.memory_space<vmem>>, %arg4: memref<1x4x128xf32, #tpu.memory_space<vmem>>) attributes {dimension_semantics = [#tpu.dimension_semantics<parallel>, #tpu.dimension_semantics<parallel>], iteration_bounds = array<i64: 2, 1>, scalar_prefetch = 1 : i64, scratch_operands = 0 : i64, tpu.core_type = #tpu.core_type<tc>, window_params = [{transform_indices = @transform_0, window_bounds = array<i64: 1, 4, 128>}, {transform_indices = @transform_1, window_bounds = array<i64: 1, 4, 128>}]} {
    %0 = arith.index_cast %arg0 : i32 to index
    %1 = memref.load %arg2[%0] : memref<2xi32, #tpu.memory_space<smem>>
    %c128_i32 = arith.constant 128 : i32
    %2 = arith.minsi %1, %c128_i32 : i32
    %c0 = arith.constant 0 : index
    %c0_0 = arith.constant 0 : index
    %c0_1 = arith.constant 0 : index
    %3 = vector.load %arg3[%c0, %c0_0, %c0_1] : memref<1x4x128xf32, #tpu.memory_space<vmem>>, vector<1x4x128xf32>
    %4 = tpu.iota {dimensions = array<i32: 2>} : vector<1x1x128xi32>
    %5 = vector.broadcast %2 : i32 to vector<1x1x128xi32>
    %6 = arith.cmpi slt, %4, %5 : vector<1x1x128xi32>
    %7 = arith.extui %6 : vector<1x1x128xi1> to vector<1x1x128xi32>
    %8 = arith.sitofp %7 : vector<1x1x128xi32> to vector<1x1x128xf32>
    %c1_i32 = arith.constant 1 : i32
    %9 = arith.maxsi %2, %c1_i32 : i32
    %10 = arith.sitofp %9 : i32 to f32
    %cst = arith.constant 1.000000e+00 : f32
    %11 = arith.divf %cst, %10 : f32
    %12 = vector.broadcast %8 : vector<1x1x128xf32> to vector<1x4x128xf32>
    %13 = arith.mulf %3, %12 : vector<1x4x128xf32>
    %cst_2 = arith.constant dense<0.000000e+00> : vector<1x4xf32>
    %14 = vector.multi_reduction <add>, %13, %cst_2 [2] : vector<1x4x128xf32> to vector<1x4xf32>
    %15 = vector.shape_cast %14 : vector<1x4xf32> to vector<1x4x1xf32>
    %16 = arith.mulf %13, %3 : vector<1x4x128xf32>
    %cst_3 = arith.constant dense<0.000000e+00> : vector<1x4xf32>
    %17 = vector.multi_reduction <add>, %16, %cst_3 [2] : vector<1x4x128xf32> to vector<1x4xf32>
    %18 = vector.shape_cast %17 : vector<1x4xf32> to vector<1x4x1xf32>
    %19 = vector.broadcast %11 : f32 to vector<1x4x1xf32>
    %20 = arith.mulf %15, %19 : vector<1x4x1xf32>
    %21 = vector.broadcast %11 : f32 to vector<1x4x1xf32>
    %22 = arith.mulf %18, %21 : vector<1x4x1xf32>
    %23 = arith.mulf %20, %20 : vector<1x4x1xf32>
    %24 = arith.subf %22, %23 : vector<1x4x1xf32>
    %cst_4 = arith.constant 0.000000e+00 : f32
    %25 = vector.broadcast %cst_4 : f32 to vector<1x4x1xf32>
    %26 = arith.maximumf %24, %25 : vector<1x4x1xf32>
    %cst_5 = arith.constant 9.99999974E-6 : f32
    %27 = vector.broadcast %cst_5 : f32 to vector<1x4x1xf32>
    %28 = arith.addf %26, %27 : vector<1x4x1xf32>
    %29 = math.rsqrt %28 : vector<1x4x1xf32>
    %30 = vector.broadcast %20 : vector<1x4x1xf32> to vector<1x4x128xf32>
    %31 = arith.subf %3, %30 : vector<1x4x128xf32>
    %32 = vector.broadcast %8 : vector<1x1x128xf32> to vector<1x4x128xf32>
    %33 = arith.mulf %31, %32 : vector<1x4x128xf32>
    %34 = vector.broadcast %29 : vector<1x4x1xf32> to vector<1x4x128xf32>
    %35 = arith.mulf %33, %34 : vector<1x4x128xf32>
    %c0_6 = arith.constant 0 : index
    %c0_7 = arith.constant 0 : index
    %c0_8 = arith.constant 0 : index
    %36 = vector.load %arg4[%c0_6, %c0_7, %c0_8] : memref<1x4x128xf32, #tpu.memory_space<vmem>>, vector<1x4x128xf32>
    tpu.vector_store %arg4[%c0_6, %c0_7, %c0_8], %35 {strides = array<i32>} : memref<1x4x128xf32, #tpu.memory_space<vmem>>, vector<1x4x128xf32>,
    return
  }
  func.func @transform_0(%arg0: i32, %arg1: i32, %arg2: memref<2xi32, #tpu.memory_space<smem>>) -> (i32, i32, i32) {
    %c0_i32 = arith.constant 0 : i32
    %c0_i32_0 = arith.constant 0 : i32
    return %arg0, %arg1, %c0_i32 : i32, i32, i32
  }
  func.func @transform_1(%arg0: i32, %arg1: i32, %arg2: memref<2xi32, #tpu.memory_space<smem>>) -> (i32, i32, i32) {
    %c0_i32 = arith.constant 0 : i32
    %c0_i32_0 = arith.constant 0 : i32
    return %arg0, %arg1, %c0_i32 : i32, i32, i32
  }
}

</mosaic_0001>

<bundles_post_ra>
// kernel: tpu_custom_call.1
= control target key start
LH: loop header
LB: loop body
LE: loop exit
PB: predicated region body
PF: predicated region fallthrough
CT: control target
= control target key end

     0   :  { %s497_s9 = smov [#allocation3]   ;;  %s658_s0 = inlined_call_operand.hbm [shape: s32[2], index: 0, kind: input, shape index: {}]   ;;  %s659_s1 = inlined_call_operand.hbm [shape: f32[2,4,128], index: 1, kind: input, shape index: {}]   ;;  %s660_s2 = inlined_call_operand.hbm [shape: f32[2,4,128], index: 2, kind: output, shape index: {}]  }
   0x1   :  { %8 = dma.hbm_to_smem %s658_s0, 16, %s497_s9, [#allocation2] }
   0x2   :  { %463 = dma.done.wait [#allocation2], 16 }
   0x3   :  { %464 = vsyncadd [#allocation2], 4294967280 }
   0x4   :  { %10 = sfence }
   0x5   :  { %11 = vsyncpa [#allocation5], 0 }
   0x6   :  { %13 = vsyncpa [#allocation5 + $0x1], 0 }
   0x7   :  { %14 = vsyncpa [#allocation6], 0 }
   0x8   :  { %16 = vsyncpa [#allocation6 + $0x1], 0  ;;  %s519_s12 = smov 0   ;;  %s521_s13 = smov 0  }
   0x9   :  { %s523_s14 = smov 0   ;;  %s525_s15 = smov 0  }
   0xa   :  { %s527_s16 = smov 0   ;;  %s529_s17 = smov 0  }
   0xb LB: > { %s286_s0 = sadd.s32 4294967295, %s495_s17   ;;  %s287_s18 = sadd.s32 4294967294, %s495_s17   ;;  %s495_s17 = sphi %s529_s17, %s22_s17   ;;  %s491_s16 = sphi %s527_s16, %s672_s16   ;;  %s487_s15 = sphi %s525_s15, %s671_s15   ;;  %s483_s14 = sphi %s523_s14, %s670_s14   ;;  %s479_s13 = sphi %s521_s13, %s669_s13   ;;  %s475_s12 = sphi %s519_s12, %s668_s12  }
   0xc   : > { %s34_s19 = sadd.s32 1, %s491_s16  ;;  %s43_s20 = sadd.s32 1, %s483_s14 }
   0xd   : > { %p36_p0 = scmp.ge.s32.totalorder %s34_s19, 2  ;;  %p50_p1 = scmp.ne.s32.totalorder %s483_s14, %s479_s13 }
   0xe   : > { %p51_p2 = scmp.eq.s32.totalorder %s495_s17, 0  ;;  %p56_p3 = scmp.ne.s32.totalorder %s479_s13, %s475_s12 }
   0xf   : > { %s674_s19 = smov (%p36_p0, %s34_s19), 0  ;;  %p57_p5 = scmp.eq.s32.totalorder %s286_s0, 0 }
  0x10   : > { %p560_p4 = por %p51_p2, %p50_p1  ;;  %s38_s22 = ssub.s32 %s491_s16, %s674_s19 }
  0x11   : > { %p82_p6 = scmp.eq.s32.totalorder %s286_s0, 1  ;;  %p41_p7 = scmp.eq.s32.totalorder %s38_s22, 0 }
  0x12   : > { %p566_p8 = por %p57_p5, %p56_p3  ;;  %p88_p10 = scmp.eq.s32.totalorder %s287_s18, 1 }
  0x13   : > { %p570_p9 = por %p82_p6, %p50_p1  ;;  %p321_p13 = scmp.lt.s32.totalorder %s495_s17, 2 }
  0x14   : > { %s575_s25 = scalar_select %p41_p7, %s483_s14, %s43_s20  }
  0x15   : > { %p577_p11 = por %p88_p10, %p56_p3  ;;  %s108_s27 = sand.u32 1, %s483_s14  }
  0x16   : > { %s290_s28 = sshll.u32 %s108_s27, 2  ;;  %s291_s29 = sshll.u32 %s491_s16, 6 }
  0x17   : > { %s664_s26 = scalar_select %p577_p11, 1, 0 }
  0x18   : > { %s118_s4 = scalar_lea.hbm %s659_s1, %s291_s29  ;;  %s112_s5 = scalar_lea.vmem [#allocation4], %s290_s28 }
  0x19   : > { %s120_s6 = sshll.u32 %s112_s5, 4  ;;  %p590_p0 = pnand %p321_p13, %p560_p4  ;;  %s121_s6 = int_to_ptr.vmem [resolvable:$true] %s120_s6 }
  0x1a   : > { %p292_p1 = scmp.ge.s32.totalorder %s495_s17, 1  ;;  %p125_p2 = scmp.lt.s32.totalorder %s495_s17, 3 }
  0x1b   : > { %s109_s8 = scalar_lea.sflag [#allocation5], %s108_s27  ;;  %p387_p3 = pneg %p590_p0 }
  0x1c   : > { %s398_s9 = scalar_lea.vmem %s121_s6, 64  ;;  %s498_s10 = smov [#allocation4]  }
  0x1d   : > { %p399_p5 = scmp.ne.s32.totalorder %s121_s6, %s398_s9  ;;  %s403_s11 = sshll.u32 %s498_s10, 4  ;;  %s404_s11 = int_to_ptr.vmem [resolvable:$false] %s403_s11 }
  0x1e   : > { %s405_s0 = scalar_lea.vmem %s404_s11, 128  ;;  %p406_p10 = scmp.lt.s32.totalorder %s121_s6, %s404_s11 }
  0x1f   : > { %p401_p6 = pnand %p399_p5, %p387_p3  ;;  %p407_p12 = scmp.lt.s32.totalorder %s405_s0, %s398_s9 }
  0x21   : > { %p402_p7 = pneg %p401_p6  ;;  %p408_p4 = por %p407_p12, %p406_p10 }
  0x23   : > { %p409_p13 = pnand %p408_p4, %p402_p7 }
  0x25   : > { %412 = shalt.err (!%p409_p13)
}
  0x26   : > { %316 = dma.hbm_to_vmem [thread:$0]  (!%p590_p0), %s118_s4, 64, %s121_s6, %s109_s8  }
  0x27   : > { %p126_p11 = pnand %p292_p1, %p125_p2 }
  0x28   : > { %s605_s18 = sand.u32 (!%p126_p11), 1, %s479_s13  }
  0x29   : > { %129 = sbr.rel (%p126_p11) target bundleno = 241 (0xf1), region = 24  ;;  %s293_s20 = sshll.u32 (!%p126_p11), %s605_s18, 2 }
  0x2a   : > { %s132_s21 = scalar_lea.sflag (!%p126_p11), [#allocation5], %s605_s18  ;;  %s135_s22 = scalar_lea.vmem (!%p126_p11), [#allocation4], %s293_s20 }
  0x2e   : > { %466 = dma.done.wait (%p566_p8), %s132_s21, 64  }
  0x2f   : > { %468 = vsyncadd (%p566_p8), %s132_s21, 4294967232  ;;  %s154_s27 = sld [smem:[#allocation3 + %s487_s15]]  ;;  %v158_v0 = vlaneseq  ;;  %v157_v2 = vld [vmem:[%s135_s22] sm:$0xf]  ;;  %v499_v4 = vmov 0.0   ;;  %vm171_vm1 = vcmask 1043456  }
  0x30   : > { %s302_s29 = sshll.u32 %s487_s15, 6  ;;  %s153_s30 = scalar_lea.vmem [#allocation7], %s293_s20 }
  0x31   : > { %v159_v1 = vand.u32 127, %v158_v0  ;;  %s206_s3 = sshll.u32 %s153_s30, 4  ;;  %s204_s6 = scalar_lea.hbm %s660_s2, %s302_s29  ;;  %s207_s3 = int_to_ptr.vmem [resolvable:$true] %s206_s3 }
  0x32   : > { %s192_s7 = scalar_lea.sflag [#allocation6], %s605_s18  ;;  %s413_s8 = scalar_lea.vmem %s207_s3, 64 }
  0x33   : > { %p414_p8 = scmp.ne.s32.totalorder %s207_s3, %s413_s8  ;;  %s500_s9 = smov [#allocation7]  }
  0x34   : > { %s417_s15 = sshll.u32 %s500_s9, 4  ;;  %s418_s15 = int_to_ptr.vmem [resolvable:$false] %s417_s15 }
  0x35   : > { %p155_p11 = scmp.lt.s32.totalorder %s154_s27, 128  ;;  %p296_p12 = scmp.gt.s32.totalorder %s154_s27, 1 }
  0x36   : > { %p415_p0 = pnand %p414_p8, %p570_p9  ;;  %s419_s10 = scalar_lea.vmem %s418_s15, 128 }
  0x37   : > { %s676_s27 = smov (!%p155_p11, %s154_s27), 128  ;;  %p420_p2 = scmp.lt.s32.totalorder %s207_s3, %s418_s15 }
  0x38   : > { %v160_v3 = vstv %s676_s27  ;;  %s678_s27 = smov (!%p296_p12, %s676_s27), 1  ;;  %p416_p1 = pneg %p415_p0 }
  0x39   : > { %vm161_vm0 = vcmp.lt.s32.totalorder %v159_v1, %v160_v3  ;;  %s166_s28 = scvt.s32.f32 %s678_s27  ;;  %p421_p3 = scmp.lt.s32.totalorder %s419_s10, %s413_s8 }
  0x3a   : > { %v295_v5 = vsel %vm161_vm0, 1.0, %v499_v4 }
  0x3b   : > { %v170_v6 = vmul.f32 %v295_v5, %v157_v2  ;;  %v167_v7 = vstv %s166_s28  ;;  %p422_p5 = por %p421_p3, %p420_p2 }
  0x3c   : > { %373 = vrcp.f32 %v167_v7 }
  0x3d   : > { %v172_v8 = vsel %vm171_vm1, %v170_v6, 0.0  ;;  %v175_v9 = vmul.f32 %v170_v6, %v157_v2  ;;  %p423_p6 = pnand %p422_p5, %p416_p1 }
  0x3e   : > { %173 = vadd.xlane.f32.xlu0 %v172_v8 }
  0x3f   : > { %v176_v10 = vsel %vm171_vm1, %v175_v9, 0.0 }
  0x42   : > { %177 = vadd.xlane.f32.xlu0 %v176_v10 }
  0x49   : > { %v374_v11 = vpop.eup %373 }
  0x4a   : > { %307 = vpush %v374_v11 }
  0x7b   : > { %s308_s23 = spop %307 }
  0x7c   : > { %v179_v12 = vstv %s308_s23 }
  0xc7   : > { %v174_v13 = vpop.xlane.xlu0 %173 }
  0xc8   : > { %v180_v14 = vmul.f32 %v179_v12, %v174_v13 }
  0xca   : > { %v182_v16 = vmul.f32 %v180_v14, %v180_v14  ;;  %v187_v21 = vsub.f32 %v157_v2, %v180_v14 }
  0xcb   : > { %v178_v15 = vpop.xlane.xlu0 %177 }
  0xcc   : > { %v181_v17 = vmul.f32 %v179_v12, %v178_v15  ;;  %v188_v22 = vmul.f32 %v295_v5, %v187_v21 }
  0xce   : > { %v183_v18 = vsub.f32 %v181_v17, %v182_v16 }
  0xd0   : > { %v184_v19 = vmax.f32 %v183_v18, 0.0 }
  0xd2   : > { %v185_v20 = vadd.f32 1e-05, %v184_v19 }
  0xd4   : > { %375 = vrsqrt.f32 %v185_v20 }
  0xe1   : > { %v376_v23 = vpop.eup %375 }
  0xe2   : > { %v189_v24 = vmul.f32 %v376_v23, %v188_v22 }
  0xe4   : > { %190 = vst [vmem:[%s153_s30] sm:$0xf] %v189_v24 }
  0xe5   : > { %426 = shalt.err (!%p423_p6)
}
  0xe6   : > { %s427_s11 = scalar_lea.hbm %s204_s6, 64  ;;  %s431_s20 = scalar_lea.hbm %s660_s2, 128 }
  0xe7   : > { %p428_p7 = scmp.ne.s32.totalorder %s204_s6, %s427_s11  ;;  %p432_p13 = scmp.lt.s32.totalorder %s204_s6, %s660_s2 }
  0xe8   : > { %p433_p11 = scmp.lt.s32.totalorder %s431_s20, %s427_s11 }
  0xe9   : > { %p429_p10 = pnand %p428_p7, %p570_p9 }
  0xea   : > { %p434_p12 = por %p433_p11, %p432_p13 }
  0xeb   : > { %p430_p4 = pneg %p429_p10 }
  0xed   : > { %p435_p8 = pnand %p434_p12, %p430_p4 }
  0xef   : > { %438 = shalt.err (!%p435_p8)
}
  0xf0   : > { %311 = dma.vmem_to_hbm [thread:$0]  (%p570_p9), %s207_s3, 64, %s204_s6, %s192_s7  }
  0xf1 PF: > { %s218_s27 = sand.u32 1, %s475_s12   ;;  %p666_p0 = scmp.ne.s32.totalorder %s664_s26, 0 }
  0xf2   : > { %p667_p1 = scmp.ge.s32.totalorder %s495_s17, 2  ;;  %s219_s28 = scalar_lea.sflag [#allocation6], %s218_s27 }
  0xf4   : > { %p318_p2 = pnand %p667_p1, %p666_p0 }
  0xf6   : > { %p319_p3 = pneg %p318_p2 }
  0xf8   : > { %470 = dma.done.wait (%p319_p3), %s219_s28, 64  }
  0xf9   : > { %472 = vsyncadd (%p319_p3), %s219_s28, 4294967232  ;;  %s22_s17 = sadd.s32 1, %s495_s17   ;;  %s668_s12 = smov %s479_s13 }
  0xfa   : > { %p19_p5 = scmp.ge.s32.totalorder %s22_s17, 4   ;;  %s669_s13 = smov %s483_s14 }
  0xfb   : > { %s670_s14 = smov %s575_s25  ;;  %s671_s15 = smov %s491_s16 }
  0xfc   : > { %s672_s16 = smov %s674_s19  ;;  %21 = sbr.rel (!%p19_p5) target bundleno = 11 (0xb), region = 69 }
 0x101   :  { %224 = vsyncpa [#allocation5], 1 }
 0x102   :  { %226 = vsyncpa [#allocation5 + $0x1], 1 }
 0x103   :  { %227 = vsyncpa [#allocation6], 1 }
 0x104   :  { %229 = vsyncpa [#allocation6 + $0x1], 1 }

</bundles_post_ra>
